<compile_context>
chip_gen: v5e
topology: v5e:2x2
jax: 0.10.0
libtpu: 0.0.40
codegen_flags: <defaults>
</compile_context>

<pallas_src>
import functools

import jax
import jax.numpy as jnp
from jax.experimental import pallas as pl
from jax.experimental.pallas import tpu as pltpu


def _hyperweight_kernel(gamma_ref, last_ref, delta_ref, upd_ref, out_ref, *, norm):
    # Clamp inside the kernel: a VPU op on a resident (K, 1) tile, completely
    # hidden under the DMA of the big streams (kernel is HBM-bound).
    g = jnp.clip(gamma_ref[...].astype(jnp.float32), 0.0, 1.0)   # (K, 1)
    last = last_ref[...]                   # (K, tn)
    delta = delta_ref[...]                 # (K, tn)
    upd = upd_ref[...]                     # (1, tn) shared update, broadcast over K
    if norm:
        res = last + (1.0 - g) * delta + g * upd
    else:
        res = last + delta + g * upd
    out_ref[...] = res.astype(out_ref.dtype)


def _vmem_limit_bytes():
    """Generation-aware scoped-VMEM limit for this kernel."""
    try:
        cap = pltpu.get_tpu_info().vmem_capacity_bytes
    except Exception:
        return 32 << 20                     # unknown part: previous safe default
    if cap >= (96 << 20):                   # v5e / v6e: 128 MiB physical VMEM
        return 64 << 20
    return min(40 << 20, cap * 5 // 8)      # v7x: 64 MiB per TC -> keep headroom


def _pick_tn(K, N, itemsize, vmem_limit_bytes):
    """Pick the lane tile (multiple of 128 dividing N) with honest VMEM math.

    Accounts for sublane padding of the (K, tn) and (1, tn) tiles and the x2
    double-buffer on every pipelined stream, then prefers:
      1) lane-dense tiles (>=512 lanes ~85% of HBM roofline vs ~29% at 128),
      2) >=4 grid steps (so each v7x TensorCore still pipelines after the
         "parallel" axis is split across the two cores),
      3) an even step count (clean 2-TC split),
      4) main blocks near ~4 MiB.
    """
    assert N % 128 == 0, "flattened parameter length must be a multiple of 128"
    sub = max(1, (8 * 4) // itemsize)       # sublane multiple: 8 f32, 16 bf16
    k_pad = -(-K // sub) * sub
    upd_pad = sub                           # (1, tn) pads to (sub, tn) in VMEM

    candidates = [t for t in range(128, N + 1, 128) if N % t == 0]

    def footprint(tn):
        # last + delta + out at (k_pad, tn), upd at (upd_pad, tn), resident
        # gamma at (k_pad, 128) f32 -- all x2 for double-buffering.
        return 2 * ((3 * k_pad + upd_pad) * tn * itemsize + k_pad * 128 * 4)

    budget = vmem_limit_bytes * 3 // 4      # headroom for compiler scratch
    fits = [t for t in candidates if footprint(t) <= budget]
    if not fits:
        # Even a 128-lane block overflows (huge K).
        # TODO(synk): tile K as well (second grid axis) for this regime.
        fits = candidates[:1]

    target_block = 4 << 20                  # ~4 MiB main (K, tn) blocks
    lane_floor = 512
    best = max(fits)

    def score(tn):
        steps = N // tn
        return (
            tn >= lane_floor or tn == best,   # lane-dense first
            steps >= 4,                       # >=2 pipelined steps per v7x TC
            steps % 2 == 0,                   # even split across the 2 TCs
            -abs(k_pad * tn * itemsize - target_block),
        )

    return max(fits, key=score)


@functools.partial(jax.jit, static_argnames=("norm",), donate_argnums=(1,))
def hyperweight_all(gamma, last_param, delta, delta_update, *, norm=True):
    """Pallas implementation of HyperWeightALL.forward on pre-stacked buffers.

    Args:
      gamma:        (K,) float32 parameter (un-clamped; clamped in-kernel).
      last_param:   (K, N) stacked flattened last params (donated & overwritten).
      delta:        (K, N) stacked flattened per-group deltas.
      delta_update: (N,)   shared flattened delta update.
    Returns:
      (K, N) stacked new flattened params.
    """
    K, N = last_param.shape
    assert gamma.shape == (K,)
    assert delta.shape == (K, N)
    assert delta_update.shape == (N,)

    itemsize = jnp.dtype(last_param.dtype).itemsize
    vmem_limit = _vmem_limit_bytes()
    tn = _pick_tn(K, N, itemsize, vmem_limit)
    grid = (N // tn,)

    gamma2d = gamma.astype(jnp.float32).reshape(K, 1)   # clamp happens in-kernel
    upd = delta_update.reshape(1, N)

    # Pure bandwidth op: ~3*K*N bytes of real HBM traffic, no transcendentals.
    cost = pl.CostEstimate(
        flops=3 * K * N,
        transcendentals=0,
        bytes_accessed=(3 * K * N + N) * itemsize + K * 4)

    out = pl.pallas_call(
        functools.partial(_hyperweight_kernel, norm=norm),
        out_shape=jax.ShapeDtypeStruct((K, N), last_param.dtype),
        grid_spec=pltpu.PrefetchScalarGridSpec(
            num_scalar_prefetch=0,
            grid=grid,
            in_specs=[
                pl.BlockSpec((K, 1), lambda j: (0, 0)),    # raw gamma (resident)
                pl.BlockSpec((K, tn), lambda j: (0, j)),   # last params tile
                pl.BlockSpec((K, tn), lambda j: (0, j)),   # per-group delta tile
                pl.BlockSpec((1, tn), lambda j: (0, j)),   # shared delta_update tile
            ],
            out_specs=pl.BlockSpec((K, tn), lambda j: (0, j)),
        ),
        input_output_aliases={1: 0},   # write new params over the last-param buffer
        cost_estimate=cost,
        compiler_params=pltpu.CompilerParams(
            dimension_semantics=("parallel",),
            vmem_limit_bytes=vmem_limit),
    )(gamma2d, last_param, delta, upd)

    return out


def hyperweight_all_ref(gamma, last_param_list, delta_list, delta_update, *, norm=True):
    g = jnp.clip(gamma, 0.0, 1.0)
    outs = []
    for i in range(len(last_param_list)):
        if norm:
            outs.append(last_param_list[i]
                        + (1.0 - g[i]) * delta_list[i]
                        + g[i] * delta_update)
        else:
            outs.append(last_param_list[i] + delta_list[i] + g[i] * delta_update)
    return outs


if __name__ == "__main__":
    key = jax.random.PRNGKey(0)

    K = 4            # number of flattened parameter groups
    N = 1024         # flattened parameter length (multiple of 128 lanes)
    init_gamma = 0.5

    # Deterministic "module parameter": gamma = ones(K) * init_gamma.
    gamma = jnp.ones((K,), dtype=jnp.float32) * init_gamma

    keys = jax.random.split(key, 2 * K + 1)
    last_param_list = [jax.random.normal(keys[i], (N,), dtype=jnp.float32)
                       for i in range(K)]
    delta_list = [jax.random.normal(keys[K + i], (N,), dtype=jnp.float32)
                  for i in range(K)]
    delta_update = jax.random.normal(keys[2 * K], (N,), dtype=jnp.float32)

    delta_stacked = jnp.stack(delta_list, axis=0)    # (K, N), built once at setup

    ok = True
    for norm in (True, False):
        # Fresh stacked last-param buffer each call (it is donated/overwritten).
        last_stacked = jnp.stack(last_param_list, axis=0)
        out = hyperweight_all(gamma, last_stacked, delta_stacked, delta_update,
                              norm=norm)
        out = jax.block_until_ready(out)

        ref_list = hyperweight_all_ref(gamma, last_param_list, delta_list,
                                       delta_update, norm=norm)
        for i, r in enumerate(ref_list):
            ok = ok and bool(jnp.allclose(out[i], r, atol=1e-5, rtol=1e-5))

    assert ok, "Pallas kernel output does not match reference"
    print("KERNEL_OK")
</pallas_src>

<mosaic_0001>
module attributes {stable_mosaic.version = 11 : i64} {
  func.func @_hyperweight_kernel(%arg0: i32, %arg1: memref<4x1xf32, #tpu.memory_space<vmem>>, %arg2: memref<4x512xf32, #tpu.memory_space<vmem>>, %arg3: memref<4x512xf32, #tpu.memory_space<vmem>>, %arg4: memref<1x512xf32, #tpu.memory_space<vmem>>, %arg5: memref<4x512xf32, #tpu.memory_space<vmem>>) attributes {dimension_semantics = [#tpu.dimension_semantics<parallel>], iteration_bounds = array<i64: 2>, scalar_prefetch = 0 : i64, scratch_operands = 0 : i64, tpu.core_type = #tpu.core_type<tc>, window_params = [{pipeline_mode = #tpu.pipeline_mode<synchronous>, transform_indices = @transform_0, window_bounds = array<i64: 4, 1>}, {transform_indices = @transform_1, window_bounds = array<i64: 4, 512>}, {transform_indices = @transform_2, window_bounds = array<i64: 4, 512>}, {transform_indices = @transform_3, window_bounds = array<i64: 1, 512>}, {transform_indices = @transform_4, window_bounds = array<i64: 4, 512>}]} {
    %c0 = arith.constant 0 : index
    %c0_0 = arith.constant 0 : index
    %0 = vector.load %arg1[%c0, %c0_0] : memref<4x1xf32, #tpu.memory_space<vmem>>, vector<4x1xf32>
    %cst = arith.constant 0.000000e+00 : f32
    %cst_1 = arith.constant 1.000000e+00 : f32
    %1 = vector.broadcast %cst : f32 to vector<4x1xf32>
    %2 = arith.maximumf %1, %0 : vector<4x1xf32>
    %3 = vector.broadcast %cst_1 : f32 to vector<4x1xf32>
    %4 = arith.minimumf %3, %2 : vector<4x1xf32>
    %c0_2 = arith.constant 0 : index
    %c0_3 = arith.constant 0 : index
    %5 = vector.load %arg2[%c0_2, %c0_3] : memref<4x512xf32, #tpu.memory_space<vmem>>, vector<4x512xf32>
    %c0_4 = arith.constant 0 : index
    %c0_5 = arith.constant 0 : index
    %6 = vector.load %arg3[%c0_4, %c0_5] : memref<4x512xf32, #tpu.memory_space<vmem>>, vector<4x512xf32>
    %c0_6 = arith.constant 0 : index
    %c0_7 = arith.constant 0 : index
    %7 = vector.load %arg4[%c0_6, %c0_7] : memref<1x512xf32, #tpu.memory_space<vmem>>, vector<1x512xf32>
    %cst_8 = arith.constant 1.000000e+00 : f32
    %8 = vector.broadcast %cst_8 : f32 to vector<4x1xf32>
    %9 = arith.subf %8, %4 : vector<4x1xf32>
    %10 = vector.broadcast %9 : vector<4x1xf32> to vector<4x512xf32>
    %11 = arith.mulf %10, %6 : vector<4x512xf32>
    %12 = arith.addf %5, %11 : vector<4x512xf32>
    %13 = vector.broadcast %4 : vector<4x1xf32> to vector<4x512xf32>
    %14 = vector.broadcast %7 : vector<1x512xf32> to vector<4x512xf32>
    %15 = arith.mulf %13, %14 : vector<4x512xf32>
    %16 = arith.addf %12, %15 : vector<4x512xf32>
    %c0_9 = arith.constant 0 : index
    %c0_10 = arith.constant 0 : index
    %17 = vector.load %arg5[%c0_9, %c0_10] : memref<4x512xf32, #tpu.memory_space<vmem>>, vector<4x512xf32>
    tpu.vector_store %arg5[%c0_9, %c0_10], %16 {strides = array<i32>} : memref<4x512xf32, #tpu.memory_space<vmem>>, vector<4x512xf32>,
    return
  }
  func.func @transform_0(%arg0: i32) -> (i32, i32) {
    %c0_i32 = arith.constant 0 : i32
    %c0_i32_0 = arith.constant 0 : i32
    %c0_i32_1 = arith.constant 0 : i32
    return %c0_i32, %c0_i32_0 : i32, i32
  }
  func.func @transform_1(%arg0: i32) -> (i32, i32) {
    %c0_i32 = arith.constant 0 : i32
    %c0_i32_0 = arith.constant 0 : i32
    return %c0_i32, %arg0 : i32, i32
  }
  func.func @transform_2(%arg0: i32) -> (i32, i32) {
    %c0_i32 = arith.constant 0 : i32
    %c0_i32_0 = arith.constant 0 : i32
    return %c0_i32, %arg0 : i32, i32
  }
  func.func @transform_3(%arg0: i32) -> (i32, i32) {
    %c0_i32 = arith.constant 0 : i32
    %c0_i32_0 = arith.constant 0 : i32
    return %c0_i32, %arg0 : i32, i32
  }
  func.func @transform_4(%arg0: i32) -> (i32, i32) {
    %c0_i32 = arith.constant 0 : i32
    %c0_i32_0 = arith.constant 0 : i32
    return %c0_i32, %arg0 : i32, i32
  }
}

</mosaic_0001>

<bundles_post_ra>
// kernel: hyperweight_all.1
= control target key start
LH: loop header
LB: loop body
LE: loop exit
PB: predicated region body
PF: predicated region fallthrough
CT: control target
= control target key end

     0   :  { %s886_s0 = inlined_call_operand.vmem [shape: f32[4,1], index: 0, kind: input, shape index: {}]   ;;  %s887_s1 = inlined_call_operand.hbm [shape: f32[4,1024], index: 1, kind: input, shape index: {}, may-alias: {1,4}]   ;;  %s888_s2 = inlined_call_operand.hbm [shape: f32[4,1024], index: 2, kind: input, shape index: {}]   ;;  %s889_s3 = inlined_call_operand.vmem [shape: f32[1,1024], index: 3, kind: input, shape index: {}]   ;;  %s890_s4 = inlined_call_operand.hbm [shape: f32[4,1024], index: 4, kind: output, shape index: {}, may-alias: {1,4}]  }
   0x1   :  { %891 = sst [smem:[#allocation11_spill]] %s887_s1 }
   0x2   :  { %9 = vsyncpa [#allocation3], 0 }
   0x3   :  { %11 = vsyncpa [#allocation3 + $0x1], 0 }
   0x4   :  { %12 = vsyncpa [#allocation6], 0 }
   0x5   :  { %14 = vsyncpa [#allocation6 + $0x1], 0 }
   0x6   :  { %15 = vsyncpa [#allocation4], 0 }
   0x7   :  { %17 = vsyncpa [#allocation4 + $0x1], 0  ;;  %s706_s15 = smov 0   ;;  %s708_s16 = smov 0  }
   0x8   :  { %s710_s17 = smov 0   ;;  %s712_s18 = smov 0  }
   0x9 LB: > { %s727_s19 = sadd.s32 4294967295, %s678_s18   ;;  %s473_s20 = sadd.s32 4294967294, %s678_s18   ;;  %s678_s18 = sphi %s712_s18, %s903_s18   ;;  %s674_s17 = sphi %s710_s17, %s902_s17   ;;  %s670_s16 = sphi %s708_s16, %s901_s16   ;;  %s666_s15 = sphi %s706_s15, %s900_s15  }
   0xa   : > { %s731_s21 = sadd.s32 1, %s678_s18   ;;  %s51_s22 = sadd.s32 1, %s674_s17 }
   0xb   : > { %s48_s23 = ssub.s32 %s678_s18, %s731_s21  ;;  %p58_p0 = scmp.ne.s32.totalorder %s674_s17, %s670_s16 }
   0xc   : > { %p49_p1 = scmp.eq.s32.totalorder %s48_s23, 0  ;;  %p59_p2 = scmp.eq.s32.totalorder %s678_s18, 0 }
   0xd   : > { %p64_p3 = scmp.ne.s32.totalorder %s670_s16, %s666_s15  ;;  %p65_p4 = scmp.eq.s32.totalorder %s727_s19, 0 }
   0xe   : > { %s743_s24 = scalar_select %p49_p1, %s674_s17, %s51_s22  }
   0xf   : > { %p745_p5 = por %p59_p2, %p58_p0  ;;  %p749_p6 = por %p65_p4, %p64_p3 }
  0x10   : > { %p140_p7 = scmp.eq.s32.totalorder %s727_s19, 1  ;;  %p146_p8 = scmp.eq.s32.totalorder %s473_s20, 1 }
  0x11   : > { %p512_p10 = scmp.lt.s32.totalorder %s678_s18, 2  ;;  %s765_s29 = sand.u32 1, %s674_s17  }
  0x12   : > { %p756_p11 = por %p140_p7, %p58_p0  ;;  %p760_p12 = por %p146_p8, %p64_p3 }
  0x13   : > { %s492_s30 = sshll.u32 %s678_s18, 4  ;;  %s476_s5 = sshll.u32 %s765_s29, 4 }
  0x14   : > { %s896_s1 = sld [smem:[#allocation11_spill]]  ;;  %s173_s10 = scalar_lea.vmem [#allocation2], %s476_s5 }
  0x15   : > { %s182_s11 = sshll.u32 %s173_s10, 4  ;;  %p774_p13 = pnand %p512_p10, %p745_p5  ;;  %s183_s11 = int_to_ptr.vmem [resolvable:$true] %s182_s11 }
  0x16   : > { %p482_p0 = scmp.ge.s32.totalorder %s678_s18, 1  ;;  %p215_p1 = scmp.lt.s32.totalorder %s678_s18, 3 }
  0x17   : > { %s170_s13 = scalar_lea.sflag [#allocation3], %s765_s29  ;;  %p552_p3 = pneg %p774_p13 }
  0x1a   : > { %s178_s8 = scalar_lea.hbm %s896_s1, %s492_s30  ;;  %s555_s25 = scalar_lea.hbm %s896_s1, 32 }
  0x1b   : > { %s180_s9 = sshll.u32 %s178_s8, 4  ;;  %s181_s9 = int_to_ptr.hbm [resolvable:$true] %s180_s9 }
  0x1c   : > { %s548_s14 = sshra.s32 %s181_s9, 4  ;;  %s549_s14 = int_to_ptr.hbm [resolvable:$true] %s548_s14 }
  0x1d   : > { %s550_s20 = scalar_lea.hbm %s549_s14, 16  ;;  %p556_p5 = scmp.lt.s32.totalorder %s549_s14, %s896_s1 }
  0x1e   : > { %p551_p2 = scmp.ne.s32.totalorder %s549_s14, %s550_s20  ;;  %p557_p8 = scmp.lt.s32.totalorder %s555_s25, %s550_s20 }
  0x20   : > { %p553_p4 = pnand %p552_p3, %p551_p2  ;;  %p558_p10 = por %p557_p8, %p556_p5 }
  0x22   : > { %p554_p7 = pneg %p553_p4 }
  0x24   : > { %p559_p9 = pnand %p558_p10, %p554_p7 }
  0x26   : > { %562 = shalt.err (!%p559_p9)
}
  0x27   : > { %504 = dma.hbm_to_vmem [thread:$0]  (!%p774_p13), %s181_s9, 256, %s183_s11, %s170_s13  }
  0x28   : > { %p798_p2 = pnand %p482_p0, %p215_p1  ;;  %s198_s14 = scalar_lea.hbm %s888_s2, %s492_s30 }
  0x29   : > { %s200_s20 = sshll.u32 %s198_s14, 4  ;;  %s193_s23 = scalar_lea.vmem [#allocation5], %s476_s5  ;;  %s201_s20 = int_to_ptr.hbm [resolvable:$true] %s200_s20 }
  0x2a   : > { %s202_s25 = sshll.u32 %s193_s23, 4  ;;  %s190_s6 = scalar_lea.sflag [#allocation6], %s765_s29  ;;  %s203_s25 = int_to_ptr.vmem [resolvable:$true] %s202_s25 }
  0x2b   : > { %s578_s7 = sshra.s32 %s201_s20, 4  ;;  %s585_s13 = scalar_lea.hbm %s888_s2, 32  ;;  %s579_s7 = int_to_ptr.hbm [resolvable:$true] %s578_s7 }
  0x2c   : > { %s580_s1 = scalar_lea.hbm %s579_s7, 16  ;;  %p586_p4 = scmp.lt.s32.totalorder %s579_s7, %s888_s2 }
  0x2d   : > { %p581_p9 = scmp.ne.s32.totalorder %s579_s7, %s580_s1  ;;  %p587_p7 = scmp.lt.s32.totalorder %s585_s13, %s580_s1 }
  0x2f   : > { %p583_p0 = pnand %p581_p9, %p552_p3  ;;  %p588_p5 = por %p587_p7, %p586_p4 }
  0x31   : > { %p584_p1 = pneg %p583_p0 }
  0x33   : > { %p589_p8 = pnand %p588_p5, %p584_p1 }
  0x35   : > { %592 = shalt.err (!%p589_p8)
}
  0x36   : > { %507 = dma.hbm_to_vmem [thread:$0]  (!%p774_p13), %s201_s20, 256, %s203_s25, %s190_s6  }
  0x37   : > { %219 = sbr.rel (%p798_p2) target bundleno = 204 (0xcc), region = 36  ;;  %s820_s29 = sand.u32 (!%p798_p2), 1, %s670_s16  }
  0x38   : > { %s823_s5 = sshll.u32 (!%p798_p2), %s820_s29, 4  ;;  %s222_s22 = scalar_lea.sflag (!%p798_p2), [#allocation3], %s820_s29 }
  0x39   : > { %s225_s1 = scalar_lea.vmem (!%p798_p2), [#allocation2], %s823_s5 }
  0x3c   : > { %653 = dma.done.wait (%p749_p6), %s222_s22, 256  }
  0x3d   : > { %655 = vsyncadd (%p749_p6), %s222_s22, 4294967040  ;;  %s232_s12 = scalar_lea.sflag [#allocation6], %s820_s29  ;;  %s235_s8 = scalar_lea.vmem [#allocation5], %s823_s5 }
  0x3e   : > { %657 = dma.done.wait (%p749_p6), %s232_s12, 256  }
  0x3f   : > { %659 = vsyncadd (%p749_p6), %s232_s12, 4294967040  ;;  %v680_v0 = vmov 0   ;;  %v278_v1 = vld [vmem:[%s886_s0] sm:$0xf]  ;;  %v283_v2 = vld [vmem:[%s235_s8] sm:$0xff]  ;;  %s486_s23 = sshll.u32 %s727_s19, 2 }
  0x40   : > { %547 = vset.pattern.permute.xlu0 %v680_v0  ;;  %v284_v3 = vld [vmem:[%s235_s8 + $0x8] sm:$0xff]  ;;  %v279_v4 = vmax.f32 %v278_v1, 0.0  ;;  %294 = vst [vmem:[#allocation1] ss:$2 sm:$0xff] %v283_v2  ;;  %p273_p13 = scmp.lt.s32.totalorder %s486_s23, 7  ;;  %vm315_vm0 = vcmask 1043456  }
  0x41   : > { %296 = vst [vmem:[#allocation1 + $0x10] ss:$2 sm:$0xff] %v284_v3  ;;  %s494_s7 = sshll.u32 %s727_s19, 4  ;;  %v281_v26 = vld [vmem:[%s225_s1] sm:$0xff]  ;;  %v282_v27 = vld [vmem:[%s225_s1 + $0x8] sm:$0xff]  ;;  %s269_s13 = scalar_lea.vmem [#allocation7], %s823_s5 }
  0x42   : > { %v280_v5 = vmin.f32 %v279_v4, 1.0  ;;  %s905_s23 = smov (!%p273_p13, %s486_s23), 7  ;;  %s366_s19 = scalar_lea.hbm %s890_s4, %s494_s7 }
  0x43   : > { %s275_s6 = scalar_lea.vmem %s889_s3, %s905_s23  ;;  %s368_s10 = sshll.u32 %s269_s13, 4  ;;  %s369_s10 = int_to_ptr.vmem [resolvable:$true] %s368_s10 }
  0x44   : > { %v286_v6 = vsub.f32 1.0, %v280_v5  ;;  %v285_v12 = vld [vmem:[%s275_s6] sm:$0xf]  ;;  %s370_s30 = sshll.u32 %s366_s19, 4  ;;  %s355_s22 = scalar_lea.sflag [#allocation4], %s820_s29  ;;  %s371_s30 = int_to_ptr.hbm [resolvable:$true] %s370_s30 }
  0x45   : > { %v329_v17 = vperm.slane %v285_v12, 1  ;;  %v331_v18 = vperm.slane %v285_v12, 3  ;;  %v328_v21 = vperm.slane %v285_v12, 0  ;;  %v330_v22 = vperm.slane %v285_v12, 2  ;;  %s622_s1 = sshra.s32 %s371_s30, 4  ;;  %s628_s14 = scalar_lea.hbm %s890_s4, 32  ;;  %s623_s1 = int_to_ptr.hbm [resolvable:$true] %s622_s1 }
  0x46   : > { %289 = vperm.xlu0 %547, %v286_v6   ;;  %s624_s12 = scalar_lea.hbm %s623_s1, 16  ;;  %p629_p2 = scmp.lt.s32.totalorder %s623_s1, %s890_s4 }
  0x47   : > { %v298_v7 = vld.sshfl [vmem:[#allocation1 + $0x8] sm:$0xff pattern:$0x75316420]  ;;  %v297_v13 = vld.sshfl [vmem:[#allocation1] sm:$0xff pattern:$0x75316420]  ;;  %p625_p6 = scmp.ne.s32.totalorder %s623_s1, %s624_s12  ;;  %p630_p9 = scmp.lt.s32.totalorder %s628_s14, %s624_s12 }
  0x48   : > { %v300_v8 = vld.sshfl [vmem:[#allocation1 + $0x18] sm:$0xff pattern:$0x75316420]  ;;  %v299_v14 = vld.sshfl [vmem:[#allocation1 + $0x10] sm:$0xff pattern:$0x75316420] }
  0x49   : > { %p626_p3 = pnand %p625_p6, %p756_p11  ;;  %p631_p0 = por %p630_p9, %p629_p2 }
  0x4b   : > { %p627_p10 = pneg %p626_p3 }
  0x4d   : > { %p632_p1 = pnand %p631_p0, %p627_p10 }
  0x4e   : > { %324 = vperm.xlu0 %547, %v280_v5  }
  0xb8   : > { %v290_v9 = vpop.permute.xlu0 %289 }
  0xb9   : > { %v306_v10 = vmul.f32 %v298_v7, %v290_v9  ;;  %v308_v11 = vmul.f32 %v300_v8, %v290_v9  ;;  %v305_v19 = vmul.f32 %v297_v13, %v290_v9  ;;  %v307_v20 = vmul.f32 %v299_v14, %v290_v9 }
  0xbb   : > { %v313_v15 = vrot.slane %v306_v10, 4  ;;  %v314_v16 = vrot.slane %v308_v11, 4 }
  0xbd   : > { %v316_v24 = vsel %vm315_vm0, %v305_v19, %v313_v15  ;;  %v317_v25 = vsel %vm315_vm0, %v307_v20, %v314_v16 }
  0xbe   : > { %v320_v34 = vadd.f32 %v316_v24, %v281_v26  ;;  %v321_v35 = vadd.f32 %v317_v25, %v282_v27 }
  0xc0   : > { %v325_v23 = vpop.permute.xlu0 %324 }
  0xc1   : > { %v337_v28 = vmul.f32 %v329_v17, %v325_v23  ;;  %v339_v29 = vmul.f32 %v331_v18, %v325_v23  ;;  %v336_v30 = vmul.f32 %v328_v21, %v325_v23  ;;  %v338_v31 = vmul.f32 %v330_v22, %v325_v23 }
  0xc3   : > { %v344_v32 = vrot.slane %v337_v28, 4  ;;  %v345_v33 = vrot.slane %v339_v29, 4 }
  0xc5   : > { %v346_v36 = vsel %vm315_vm0, %v336_v30, %v344_v32  ;;  %v347_v37 = vsel %vm315_vm0, %v338_v31, %v345_v33 }
  0xc6   : > { %v350_v38 = vadd.f32 %v346_v36, %v320_v34  ;;  %v351_v39 = vadd.f32 %v347_v37, %v321_v35 }
  0xc8   : > { %352 = vst [vmem:[%s269_s13] sm:$0xff] %v350_v38 }
  0xc9   : > { %353 = vst [vmem:[%s269_s13 + $0x8] sm:$0xff] %v351_v39 }
  0xca   : > { %635 = shalt.err (!%p632_p1)
}
  0xcb   : > { %499 = dma.vmem_to_hbm [thread:$0]  (%p756_p11), %s369_s10, 256, %s371_s30, %s355_s22  }
  0xcc PF: > { %s382_s29 = sand.u32 1, %s666_s15   ;;  %p899_p4 = scmp.ge.s32.totalorder %s678_s18, 2 }
  0xcd   : > { %s383_s26 = scalar_lea.sflag [#allocation4], %s382_s29 }
  0xce   : > { %p509_p7 = pnand %p899_p4, %p760_p12 }
  0xd0   : > { %p510_p5 = pneg %p509_p7 }
  0xd2   : > { %661 = dma.done.wait (%p510_p5), %s383_s26, 256  }
  0xd3   : > { %663 = vsyncadd (%p510_p5), %s383_s26, 4294967040  ;;  %p20_p8 = scmp.ge.s32.totalorder %s731_s21, 4   ;;  %s900_s15 = smov %s670_s16 }
  0xd4   : > { %s901_s16 = smov %s674_s17  ;;  %s902_s17 = smov %s743_s24 }
  0xd5   : > { %s903_s18 = smov %s731_s21  ;;  %22 = sbr.rel (!%p20_p8) target bundleno = 9 (0x9), region = 98 }
  0xda   :  { %389 = vsyncpa [#allocation3], 1 }
  0xdb   :  { %391 = vsyncpa [#allocation3 + $0x1], 1 }
  0xdc   :  { %392 = vsyncpa [#allocation6], 1 }
  0xdd   :  { %394 = vsyncpa [#allocation6 + $0x1], 1 }
  0xde   :  { %395 = vsyncpa [#allocation4], 1 }
  0xdf   :  { %397 = vsyncpa [#allocation4 + $0x1], 1 }

</bundles_post_ra>
